<compile_context>
chip_gen: v5e
topology: v5e:2x2
jax: 0.10.0
libtpu: 0.0.40
codegen_flags: <defaults>
</compile_context>

<pallas_src>
import jax
import jax.numpy as jnp
from jax import lax
from jax.experimental import pallas as pl
from jax.experimental.pallas import tpu as pltpu

F_IN = 8      # linear in_features
F_OUT = 8     # linear out_features
MAX_TB = 512  # batch tile (rows) once B grows; sublane-aligned (multiple of 8)


def _linear_leaky_kernel(x_ref, w_ref, b_ref, o_ref):
    """x_ref:(TB,F_IN)  w_ref:(F_OUT,F_IN)  b_ref:(1,F_OUT)  o_ref:(TB,F_OUT)."""
    x = x_ref[...]                      # (TB, F_IN)
    w = w_ref[...]                      # (F_OUT, F_IN)  -- torch layout (out, in)

    # v1 = x @ W^T + b : contract x dim 1 with w dim 1 (no explicit transpose op).
    v1 = lax.dot_general(
        x, w, (((1,), (1,)), ((), ())),
        preferred_element_type=jnp.float32,
    ) + b_ref[...]                      # (1, F_OUT) broadcasts against (TB, F_OUT)

    # m1 = v1 > 0 ; v2 = 0.2 * v1 ; v3 = where(m1, v1, v2)  (leaky select on VPU)
    o_ref[...] = jnp.where(v1 > 0, v1, v1 * jnp.float32(0.2)).astype(o_ref.dtype)


def _pallas_linear_leaky(x, weight, bias_2d):
    B = x.shape[0]
    vmem = pltpu.MemorySpace.VMEM
    tb = B if B <= MAX_TB else MAX_TB   # B<=MAX_TB: single full-extent block
    grid = (pl.cdiv(B, tb),)
    return pl.pallas_call(
        _linear_leaky_kernel,
        out_shape=jax.ShapeDtypeStruct((B, F_OUT), x.dtype),
        grid=grid,
        in_specs=[
            pl.BlockSpec((tb, F_IN), lambda i: (i, 0), memory_space=vmem),
            pl.BlockSpec((F_OUT, F_IN), lambda i: (0, 0), memory_space=vmem),
            pl.BlockSpec((1, F_OUT), lambda i: (0, 0), memory_space=vmem),
        ],
        out_specs=pl.BlockSpec((tb, F_OUT), lambda i: (i, 0), memory_space=vmem),
        compiler_params=pltpu.CompilerParams(
            dimension_semantics=("parallel",),
        ),
    )(x, weight, bias_2d)


@jax.jit
def model_forward(x, weight, bias):
    """x: (B, 8) f32, weight: (8, 8) f32 (out, in), bias: (8,) f32 -> (B, 8) f32."""
    # Only prep: (8,) -> (1, 8) reshape (metadata-only). No padding, no transpose.
    return _pallas_linear_leaky(x, weight, bias.reshape(1, F_OUT))


if __name__ == "__main__":
    key = jax.random.PRNGKey(0)
    kx, kw, kb = jax.random.split(key, 3)

    # Deterministic params (mimic nn.Linear's U(-1/sqrt(fan_in), 1/sqrt(fan_in)))
    bound = 1.0 / jnp.sqrt(jnp.float32(F_IN))
    weight = jax.random.uniform(kw, (F_OUT, F_IN), jnp.float32, -bound, bound)  # (out, in)
    bias = jax.random.uniform(kb, (F_OUT,), jnp.float32, -bound, bound)

    # Input consistent with the module: x1 ~ randn(1, 8)
    x1 = jax.random.normal(kx, (1, F_IN), jnp.float32)

    out = model_forward(x1, weight, bias)
    jax.block_until_ready(out)

    # Reference check in plain JAX
    v1 = x1 @ weight.T + bias
    ref = jnp.where(v1 > 0, v1, v1 * 0.2)
    assert out.shape == ref.shape
    assert jnp.allclose(out, ref, atol=1e-5, rtol=1e-5), "mismatch vs reference"

    print("KERNEL_OK")
</pallas_src>

<mosaic_0001>
module attributes {stable_mosaic.version = 11 : i64} {
  func.func @_linear_leaky_kernel(%arg0: i32, %arg1: memref<1x8xf32, #tpu.memory_space<vmem>>, %arg2: memref<8x8xf32, #tpu.memory_space<vmem>>, %arg3: memref<1x8xf32, #tpu.memory_space<vmem>>, %arg4: memref<1x8xf32, #tpu.memory_space<vmem>>) attributes {dimension_semantics = [#tpu.dimension_semantics<parallel>], iteration_bounds = array<i64: 1>, scalar_prefetch = 0 : i64, scratch_operands = 0 : i64, tpu.core_type = #tpu.core_type<tc>, window_params = [{transform_indices = @transform_0, window_bounds = array<i64: 1, 8>}, {pipeline_mode = #tpu.pipeline_mode<synchronous>, transform_indices = @transform_1, window_bounds = array<i64: 8, 8>}, {pipeline_mode = #tpu.pipeline_mode<synchronous>, transform_indices = @transform_2, window_bounds = array<i64: 1, 8>}, {transform_indices = @transform_3, window_bounds = array<i64: 1, 8>}]} {
    %c0 = arith.constant 0 : index
    %c0_0 = arith.constant 0 : index
    %0 = vector.load %arg1[%c0, %c0_0] : memref<1x8xf32, #tpu.memory_space<vmem>>, vector<1x8xf32>
    %c0_1 = arith.constant 0 : index
    %c0_2 = arith.constant 0 : index
    %1 = vector.load %arg2[%c0_1, %c0_2] : memref<8x8xf32, #tpu.memory_space<vmem>>, vector<8x8xf32>
    %cst = arith.constant dense<0.000000e+00> : vector<1x8xf32>
    %2 = tpu.matmul %0, %1, %cst {dimension_numbers = #tpu.dot_dimension_numbers<[1], [1], [0], [0], [0, 0, 1, 0], [], []>} : vector<1x8xf32>, vector<8x8xf32>, vector<1x8xf32> -> vector<1x8xf32>
    %c0_3 = arith.constant 0 : index
    %c0_4 = arith.constant 0 : index
    %3 = vector.load %arg3[%c0_3, %c0_4] : memref<1x8xf32, #tpu.memory_space<vmem>>, vector<1x8xf32>
    %4 = arith.addf %2, %3 : vector<1x8xf32>
    %cst_5 = arith.constant 0.000000e+00 : f32
    %5 = vector.broadcast %cst_5 : f32 to vector<1x8xf32>
    %6 = arith.cmpf ogt, %4, %5 : vector<1x8xf32>
    %cst_6 = arith.constant 2.000000e-01 : f32
    %7 = vector.broadcast %cst_6 : f32 to vector<1x8xf32>
    %8 = arith.mulf %4, %7 : vector<1x8xf32>
    %9 = arith.select %6, %4, %8 : vector<1x8xi1>, vector<1x8xf32>
    %c0_7 = arith.constant 0 : index
    %c0_8 = arith.constant 0 : index
    %10 = vector.load %arg4[%c0_7, %c0_8] : memref<1x8xf32, #tpu.memory_space<vmem>>, vector<1x8xf32>
    tpu.vector_store %arg4[%c0_7, %c0_8], %9 {strides = array<i32>} : memref<1x8xf32, #tpu.memory_space<vmem>>, vector<1x8xf32>,
    return
  }
  func.func @transform_0(%arg0: i32) -> (i32, i32) {
    %c0_i32 = arith.constant 0 : i32
    %c0_i32_0 = arith.constant 0 : i32
    return %arg0, %c0_i32 : i32, i32
  }
  func.func @transform_1(%arg0: i32) -> (i32, i32) {
    %c0_i32 = arith.constant 0 : i32
    %c0_i32_0 = arith.constant 0 : i32
    %c0_i32_1 = arith.constant 0 : i32
    return %c0_i32, %c0_i32_0 : i32, i32
  }
  func.func @transform_2(%arg0: i32) -> (i32, i32) {
    %c0_i32 = arith.constant 0 : i32
    %c0_i32_0 = arith.constant 0 : i32
    %c0_i32_1 = arith.constant 0 : i32
    return %c0_i32, %c0_i32_0 : i32, i32
  }
  func.func @transform_3(%arg0: i32) -> (i32, i32) {
    %c0_i32 = arith.constant 0 : i32
    %c0_i32_0 = arith.constant 0 : i32
    return %arg0, %c0_i32 : i32, i32
  }
}

</mosaic_0001>

<bundles_post_ra>
// kernel: model_forward.1
= control target key start
LH: loop header
LB: loop body
LE: loop exit
PB: predicated region body
PF: predicated region fallthrough
CT: control target
= control target key end

     0   :  { %8 = vsyncpa [#allocation3], 0  ;;  %s214_s0 = inlined_call_operand.hbm [shape: f32[1,8], index: 0, kind: input, shape index: {}]   ;;  %s215_s1 = inlined_call_operand.hbm [shape: f32[8,8], index: 1, kind: input, shape index: {}]   ;;  %s216_s2 = inlined_call_operand.vmem [shape: f32[1,8], index: 2, kind: input, shape index: {}]   ;;  %s217_s3 = inlined_call_operand.hbm [shape: f32[1,8], index: 3, kind: output, shape index: {}]  }
   0x1   :  { %9 = vsyncpa [#allocation6], 0 }
   0x2   :  { %10 = vsyncpa [#allocation4], 0  ;;  %s16_s14 = sshll.u32 %s214_s0, 4  ;;  %s179_s15 = smov [#allocation2]   ;;  %s17_s14 = int_to_ptr.hbm [resolvable:$true] %s16_s14 }
   0x3   :  { %s18_s16 = sshll.u32 %s179_s15, 4  ;;  %s27_s19 = sshll.u32 %s215_s1, 4  ;;  %s19_s16 = int_to_ptr.vmem [resolvable:$true] %s18_s16  ;;  %s28_s19 = int_to_ptr.hbm [resolvable:$true] %s27_s19 }
   0x4   :  { %21 = dma.hbm_to_vmem [thread:$0]  %s17_s14, 16, %s19_s16, [#allocation3]  }
   0x5   :  { %s180_s20 = smov [#allocation5]  }
   0x6   :  { %s29_s21 = sshll.u32 %s180_s20, 4  ;;  %s30_s21 = int_to_ptr.vmem [resolvable:$true] %s29_s21 }
   0x7   :  { %32 = dma.hbm_to_vmem [thread:$0]  %s28_s19, 128, %s30_s21, [#allocation6]  }
   0x8   :  { %173 = dma.done.wait [#allocation3], 16  }
   0x9   :  { %174 = vsyncadd [#allocation3], 4294967280 }
   0xa   :  { %175 = dma.done.wait [#allocation6], 128  }
   0xb   :  { %176 = vsyncadd [#allocation6], 4294967168  ;;  %vm46_vm0 = vcmask 64512   ;;  %v44_v0 = vld [vmem:[#allocation5] sm:$0xff]  ;;  %v43_v1 = vld [vmem:[#allocation2] sm:$0x1] }
   0xc   :  { %96 = vmatpush.xpose.msk.msra.mxu0 %vm46_vm0, %v44_v0  ;;  %v45_v2 = vld [vmem:[%s216_s2] sm:$0x1]  ;;  %s181_s1 = smov [#allocation7]   ;;  %s85_s26 = sshll.u32 %s217_s3, 4  ;;  %vm76_vm2 = vcmask 57344   ;;  %s86_s26 = int_to_ptr.hbm [resolvable:$true] %s85_s26 }
   0xd   :  { %s83_s23 = sshll.u32 %s181_s1, 4  ;;  %s84_s23 = int_to_ptr.vmem [resolvable:$true] %s83_s23 }
   0xf   :  { %97 = vmatmul.msk.f32.vlgmr.msra.gmra.mxu0 %vm46_vm0, %v43_v1 }
  0x8c   :  { %v70_v3 = vpop.f32.mrf.mxu0 }
  0x8d   :  { %v71_v4 = vadd.f32 %v70_v3, %v45_v2 }
  0x8f   :  { %vm73_vm1 = vcmp.gt.f32.partialorder %v71_v4, 0.0  ;;  %v74_v5 = vmul.f32 0.2, %v71_v4 }
  0x91   :  { %v75_v6 = vsel %vm73_vm1, %v71_v4, %v74_v5 }
  0x92   :  { %77 = vst.msk [vmem:[#allocation7] sm:$0x1] %vm76_vm2, %v75_v6 }
  0x93   :  { %88 = dma.vmem_to_hbm [thread:$0]  %s84_s23, 16, %s86_s26, [#allocation4]  }
  0x94   :  { %177 = dma.done.wait [#allocation4], 16  }
  0x95   :  { %178 = vsyncadd [#allocation4], 4294967280 }
  0x96   :  { %93 = vsyncpa [#allocation3], 1 }
  0x97   :  { %94 = vsyncpa [#allocation6], 1 }
  0x98   :  { %95 = vsyncpa [#allocation4], 1 }

</bundles_post_ra>
